<compile_context>
chip_gen: v7x
topology: tpu7x:2x2x1
jax: 0.10.0
libtpu: 0.0.40
codegen_flags: <defaults>
</compile_context>

<pallas_src>
import functools

import numpy as np
import jax
import jax.numpy as jnp
from jax.experimental import pallas as pl
from jax.experimental.pallas import tpu as pltpu

NEG_BIAS = -1e9  # keep finite: online-softmax corr relies on exp(m_prev - m_new) being finite


def _round_up(x, m):
    return (x + m - 1) // m * m


# ----------------------------------------------------------------------------
# Kernel 1: fused per-layer projection (all heads in one matmul)
# ----------------------------------------------------------------------------
def _gat_project_kernel(x_ref, w_ref, a_ref, hh_ref, alpha_ref):
    """hh = x @ W (all heads), alpha = hh @ A_blockdiag (all a_dst/a_src dots fused).

    x_ref     : [TQ, F_in]   f32/bf16 (cast to bf16 at the MXU boundary)
    w_ref     : [F_in, HF]   bf16 (true width, no lane padding)
    a_ref     : [HF, 2H]     bf16 block-diagonal: cols [0:H]=a_dst, [H:2H]=a_src
    hh_ref    : [TQ, HF]     bf16 out
    alpha_ref : [TQ, 2H]     f32 out
    """
    x = x_ref[...].astype(jnp.bfloat16)
    hh = jnp.dot(x, w_ref[...], preferred_element_type=jnp.float32)
    hh_bf = hh.astype(jnp.bfloat16)
    hh_ref[...] = hh_bf
    alpha_ref[...] = jnp.dot(hh_bf, a_ref[...], preferred_element_type=jnp.float32)


def gat_project(x, w, a_blk, *, tile):
    n_pad, f_in = x.shape
    hf = w.shape[1]
    two_h = a_blk.shape[1]
    return pl.pallas_call(
        _gat_project_kernel,
        out_shape=(jax.ShapeDtypeStruct((n_pad, hf), jnp.bfloat16),
                   jax.ShapeDtypeStruct((n_pad, two_h), jnp.float32)),
        grid=(n_pad // tile,),
        in_specs=[
            pl.BlockSpec((tile, f_in), lambda i: (i, 0)),
            pl.BlockSpec((f_in, hf), lambda i: (0, 0)),
            pl.BlockSpec((hf, two_h), lambda i: (0, 0)),
        ],
        out_specs=(
            pl.BlockSpec((tile, hf), lambda i: (i, 0)),
            pl.BlockSpec((tile, two_h), lambda i: (i, 0)),
        ),
        compiler_params=pltpu.CompilerParams(dimension_semantics=("parallel",)),
    )(x, w, a_blk)


# ----------------------------------------------------------------------------
# Kernel 2: block-sparse attention with online (flash-style) softmax
# ----------------------------------------------------------------------------
def _gat_attention_kernel(blk_ref, cnt_ref, adst_ref, asrcT_ref, mask_ref, hsrc_ref,
                          out_ref, m_sc, l_sc, acc_sc,
                          *, num_heads, f_out, scaling, apply_act, concat):
    """One (dst-tile, non-empty-src-block) step of masked-softmax attention, all heads.

    blk_ref/cnt_ref : SMEM scalar-prefetch (block ids / per-dst-tile counts)
    adst_ref  : [TQ, H]   f32   alpha_dst for this dst tile
    asrcT_ref : [H, TK]   f32   alpha_src (pre-transposed) for this src tile
    mask_ref  : [TQ, TK]  int8  1 = non-edge, 0 = edge
    hsrc_ref  : [TK, HF]  bf16  projected source-node features (true width)
    out_ref   : [TQ, OUT] bf16/f32  layer output (written on the last src step only)
    m_sc/l_sc : [TQ, H]   f32   running max / softmax denominator per head
    acc_sc    : [TQ, HF]  f32   running weighted sum
    """
    qi = pl.program_id(0)
    ki = pl.program_id(1)

    @pl.when(ki == 0)
    def _init():
        m_sc[...] = jnp.full(m_sc.shape, -jnp.inf, dtype=m_sc.dtype)
        l_sc[...] = jnp.zeros(l_sc.shape, l_sc.dtype)
        acc_sc[...] = jnp.zeros(acc_sc.shape, acc_sc.dtype)

    @pl.when(ki < cnt_ref[qi])        # ragged guard: skip padded block-list entries
    def _accumulate():
        bias = mask_ref[...].astype(jnp.float32) * jnp.float32(NEG_BIAS)   # [TQ, TK]
        adst = adst_ref[...]
        asrcT = asrcT_ref[...]
        hh = hsrc_ref[...]
        m_prev = m_sc[...]
        l_prev = l_sc[...]
        acc_prev = acc_sc[...]

        m_cols, l_cols, acc_cols = [], [], []
        for h in range(num_heads):                     # static unroll (H small)
            e = adst[:, h:h + 1] + asrcT[h:h + 1, :]   # broadcast add on VPU
            e = jnp.where(e > 0, e, scaling * e)       # LeakyReLU
            e = e + bias                               # additive edge mask
            m_p = m_prev[:, h:h + 1]
            m_n = jnp.maximum(m_p, jnp.max(e, axis=1, keepdims=True))
            corr = jnp.exp(m_p - m_n)
            p = jnp.exp(e - m_n)                       # non-edges underflow to exactly 0
            l_cols.append(corr * l_prev[:, h:h + 1] + jnp.sum(p, axis=1, keepdims=True))
            m_cols.append(m_n)
            c0 = h * f_out
            pv = jnp.dot(p.astype(jnp.bfloat16), hh[:, c0:c0 + f_out],
                         preferred_element_type=jnp.float32)
            acc_cols.append(corr * acc_prev[:, c0:c0 + f_out] + pv)

        # ONE full-width store per scratch per step (no per-head narrow stores).
        m_sc[...] = m_cols[0] if num_heads == 1 else jnp.concatenate(m_cols, axis=1)
        l_sc[...] = l_cols[0] if num_heads == 1 else jnp.concatenate(l_cols, axis=1)
        acc_sc[...] = acc_cols[0] if num_heads == 1 else jnp.concatenate(acc_cols, axis=1)

    @pl.when(ki == pl.num_programs(1) - 1)
    def _finalize():
        inv_l = pl.reciprocal(jnp.maximum(l_sc[...], 1e-30), approx=True)   # [TQ, H]
        # Rows with no incoming edge (incl. padding rows) stay exactly 0, matching the
        # masked-softmax intent (PyTorch softmax would produce NaN for zero-in-degree rows).
        valid = m_sc[...] > jnp.float32(0.5 * NEG_BIAS)                     # [TQ, H]
        pieces = []
        for h in range(num_heads):
            c0 = h * f_out
            o_h = jnp.where(valid[:, h:h + 1],
                            acc_sc[:, c0:c0 + f_out] * inv_l[:, h:h + 1], 0.0)
            pieces.append(o_h)

        if concat:
            res = pieces[0] if num_heads == 1 else jnp.concatenate(pieces, axis=1)
        else:
            res = pieces[0]
            for o_h in pieces[1:]:
                res = res + o_h
            if num_heads > 1:
                res = res * jnp.float32(1.0 / num_heads)

        if apply_act:  # ELU
            res = jnp.where(res > 0, res, jnp.exp(jnp.minimum(res, 0.0)) - 1.0)

        out_ref[...] = res.astype(out_ref.dtype)


def gat_attention(block_ids, counts, alpha_dst, alpha_src_t, nonedge, hh, *,
                  num_heads, f_out, out_dim, out_dtype, scaling, apply_act, concat, tile):
    n_pad, hf = hh.shape
    n_dst_tiles, max_nnz = block_ids.shape
    kernel = functools.partial(
        _gat_attention_kernel, num_heads=num_heads, f_out=f_out,
        scaling=scaling, apply_act=apply_act, concat=concat)
    return pl.pallas_call(
        kernel,
        out_shape=jax.ShapeDtypeStruct((n_pad, out_dim), out_dtype),
        grid_spec=pltpu.PrefetchScalarGridSpec(
            num_scalar_prefetch=2,
            grid=(n_dst_tiles, max_nnz),
            in_specs=[
                pl.BlockSpec((tile, num_heads), lambda qi, ki, blk, cnt: (qi, 0)),
                pl.BlockSpec((num_heads, tile), lambda qi, ki, blk, cnt: (0, blk[qi, ki])),
                pl.BlockSpec((tile, tile), lambda qi, ki, blk, cnt: (qi, blk[qi, ki])),
                pl.BlockSpec((tile, hf), lambda qi, ki, blk, cnt: (blk[qi, ki], 0)),
            ],
            out_specs=pl.BlockSpec((tile, out_dim), lambda qi, ki, blk, cnt: (qi, 0)),
            scratch_shapes=[
                pltpu.VMEM((tile, num_heads), jnp.float32),   # running max per head
                pltpu.VMEM((tile, num_heads), jnp.float32),   # running denom per head
                pltpu.VMEM((tile, hf), jnp.float32),          # running weighted sum
            ]),
        compiler_params=pltpu.CompilerParams(
            dimension_semantics=("parallel", "arbitrary")),
    )(block_ids, counts, alpha_dst, alpha_src_t, nonedge, hh)


# ----------------------------------------------------------------------------
# Kernel 3: graph-level mean readout (scatter_mean) as a single-shot matmul
# ----------------------------------------------------------------------------
def _readout_kernel(m_ref, x_ref, o_ref):
    o_ref[...] = jnp.dot(m_ref[...], x_ref[...], preferred_element_type=jnp.float32)


def graph_mean_readout(x_pad, batch_vector, num_graphs, n_real):
    n_pad, f = x_pad.shape
    onehot = (batch_vector[None, :] == jnp.arange(num_graphs)[:, None]).astype(jnp.float32)
    counts = jnp.maximum(jnp.sum(onehot, axis=1, keepdims=True), 1.0)
    m = jnp.zeros((num_graphs, n_pad), jnp.float32).at[:, :n_real].set(onehot / counts)
    # Tiny problem (G x F output): single pallas_call, whole operands resident in VMEM.
    return pl.pallas_call(
        _readout_kernel,
        out_shape=jax.ShapeDtypeStruct((num_graphs, f), jnp.float32),
    )(m, x_pad.astype(jnp.float32))


# ----------------------------------------------------------------------------
# Parameters & forward pass
# ----------------------------------------------------------------------------
def init_gat_params(key, n_in, n_hidden, n_out, num_layers, num_heads):
    """Deterministic synthetic parameters matching GATModel.__init__ shapes."""
    params = []
    f_in = n_in
    for _ in range(num_layers):
        key, k1, k2, k3 = jax.random.split(key, 4)
        params.append(dict(
            w=jax.random.normal(k1, (f_in, num_heads * n_hidden), jnp.float32) * 0.1,
            a_src=jax.random.normal(k2, (n_hidden, num_heads), jnp.float32) * 0.1,
            a_dst=jax.random.normal(k3, (n_hidden, num_heads), jnp.float32) * 0.1,
            num_heads=num_heads, f_out=n_hidden, concat=True, apply_act=True))
        f_in = n_hidden * num_heads
    key, k1, k2, k3 = jax.random.split(key, 4)
    params.append(dict(
        w=jax.random.normal(k1, (f_in, n_out), jnp.float32) * 0.1,
        a_src=jax.random.normal(k2, (n_out, 1), jnp.float32) * 0.1,
        a_dst=jax.random.normal(k3, (n_out, 1), jnp.float32) * 0.1,
        num_heads=1, f_out=n_out, concat=False, apply_act=False))
    return params


def gat_model_forward(node_features, edge_index, batch_vector, params, *,
                      scaling=0.2, output_level="graph", num_graphs=1, tile=256):
    n = node_features.shape[0]
    n_pad = _round_up(n, tile)
    n_tiles = n_pad // tile

    # --- host-side (static) block-sparsity extraction; grid extents must be static ---
    ei = np.asarray(edge_index)
    src_np, dst_np = ei[0], ei[1]

    # int8 non-edge mask (1 = no edge src->dst, 0 = edge), built once, reused every layer.
    nonedge_np = np.ones((n_pad, n_pad), np.int8)
    nonedge_np[dst_np, src_np] = 0
    nonedge = jnp.asarray(nonedge_np)

    # per-dst-tile list of src tiles containing at least one edge
    blk_mask = np.zeros((n_tiles, n_tiles), bool)
    blk_mask[dst_np // tile, src_np // tile] = True
    counts_np = blk_mask.sum(axis=1).astype(np.int32)
    max_nnz = max(int(counts_np.max()), 1)
    block_ids_np = np.zeros((n_tiles, max_nnz), np.int32)
    for qi in range(n_tiles):
        ids = np.nonzero(blk_mask[qi])[0].astype(np.int32)
        if ids.size:
            block_ids_np[qi, :ids.size] = ids
            block_ids_np[qi, ids.size:] = ids[-1]     # clamp; guarded by pl.when in-kernel
    block_ids = jnp.asarray(block_ids_np)
    counts = jnp.asarray(counts_np)

    x = jnp.zeros((n_pad, node_features.shape[1]), jnp.float32).at[:n].set(node_features)

    n_layers = len(params)
    for li, p in enumerate(params):
        num_heads, f_out, concat = p["num_heads"], p["f_out"], p["concat"]
        hf = num_heads * f_out
        out_dim = hf if concat else f_out
        is_last = (li == n_layers - 1)

        # Wrapper-side layout plumbing: block-diagonal attention-vector matrix so all
        # 2H attention dot products come out of one matmul.
        w = p["w"].astype(jnp.bfloat16)                               # [f_in, hf]
        a_blk = jnp.zeros((hf, 2 * num_heads), jnp.bfloat16)
        for h in range(num_heads):
            a_blk = a_blk.at[h * f_out:(h + 1) * f_out, h].set(
                p["a_dst"][:, h].astype(jnp.bfloat16))
            a_blk = a_blk.at[h * f_out:(h + 1) * f_out, num_heads + h].set(
                p["a_src"][:, h].astype(jnp.bfloat16))

        hh, alpha = gat_project(x, w, a_blk, tile=tile)
        alpha_dst = alpha[:, :num_heads]                     # [N_pad, H]
        alpha_src_t = jnp.transpose(alpha[:, num_heads:])    # [H, N_pad]  (tiny glue)

        out_dtype = jnp.float32 if is_last else jnp.bfloat16
        x = gat_attention(block_ids, counts, alpha_dst, alpha_src_t, nonedge, hh,
                          num_heads=num_heads, f_out=f_out, out_dim=out_dim,
                          out_dtype=out_dtype, scaling=scaling,
                          apply_act=p["apply_act"], concat=concat, tile=tile)

    if output_level == "graph":
        return graph_mean_readout(x, batch_vector, num_graphs, n)
    return x[:n]


# ----------------------------------------------------------------------------
# Example
# ----------------------------------------------------------------------------
if __name__ == "__main__":
    key = jax.random.PRNGKey(0)

    # model config
    n_input_features = 8
    n_hidden_features = 16
    n_out_features = 4
    num_layers = 2
    num_heads = 2
    scaling = 0.2
    tile = 256

    # graph: 2 ring graphs of 256 and 320 nodes (+ self loops).  N = 576 pads to 768,
    # so with tile=256 the attention grid is (3 dst tiles x up to 2 src blocks) and the
    # block-sparse lists are ragged (counts = [1, 2, 2]) — exercising the pl.when guard,
    # the multi-block online softmax, and the "parallel" dst axis.
    graph_sizes = [256, 320]
    num_graphs = len(graph_sizes)
    src_list, dst_list, batch_list = [], [], []
    base = 0
    for g, sz in enumerate(graph_sizes):
        for i in range(sz):
            a = base + i
            b = base + (i + 1) % sz
            src_list += [a, b, a]      # forward ring, backward ring, self loop
            dst_list += [b, a, a]
        batch_list += [g] * sz
        base += sz
    n_nodes = base
    edge_index = jnp.array([src_list, dst_list], dtype=jnp.int32)        # [2, 1728]
    batch_vector = jnp.array(batch_list, dtype=jnp.int32)                # [576]

    key, kx, kp = jax.random.split(key, 3)
    node_features = jax.random.normal(kx, (n_nodes, n_input_features), jnp.float32)
    params = init_gat_params(kp, n_input_features, n_hidden_features,
                             n_out_features, num_layers, num_heads)

    out = gat_model_forward(node_features, edge_index, batch_vector, params,
                            scaling=scaling, output_level="graph",
                            num_graphs=num_graphs, tile=tile)
    out = jax.block_until_ready(out)
    assert out.shape == (num_graphs, n_out_features)
    assert bool(jnp.all(jnp.isfinite(out)))
    print("KERNEL_OK")
</pallas_src>

<mosaic_0001>
module attributes {stable_mosaic.version = 11 : i64} {
  func.func @_gat_project_kernel(%arg0: i32, %arg1: memref<256x8xf32, #tpu.memory_space<vmem>>, %arg2: memref<8x32xbf16, #tpu.memory_space<vmem>>, %arg3: memref<32x4xbf16, #tpu.memory_space<vmem>>, %arg4: memref<256x32xbf16, #tpu.memory_space<vmem>>, %arg5: memref<256x4xf32, #tpu.memory_space<vmem>>) attributes {dimension_semantics = [#tpu.dimension_semantics<parallel>], iteration_bounds = array<i64: 3>, scalar_prefetch = 0 : i64, scratch_operands = 0 : i64, tpu.core_type = #tpu.core_type<tc>, window_params = [{transform_indices = @transform_0, window_bounds = array<i64: 256, 8>}, {pipeline_mode = #tpu.pipeline_mode<synchronous>, transform_indices = @transform_1, window_bounds = array<i64: 8, 32>}, {pipeline_mode = #tpu.pipeline_mode<synchronous>, transform_indices = @transform_2, window_bounds = array<i64: 32, 4>}, {transform_indices = @transform_3, window_bounds = array<i64: 256, 32>}, {transform_indices = @transform_4, window_bounds = array<i64: 256, 4>}]} {
    %c0 = arith.constant 0 : index
    %c0_0 = arith.constant 0 : index
    %0 = vector.load %arg1[%c0, %c0_0] : memref<256x8xf32, #tpu.memory_space<vmem>>, vector<256x8xf32>
    %1 = arith.truncf %0 : vector<256x8xf32> to vector<256x8xbf16>
    %c0_1 = arith.constant 0 : index
    %c0_2 = arith.constant 0 : index
    %2 = vector.load %arg2[%c0_1, %c0_2] : memref<8x32xbf16, #tpu.memory_space<vmem>>, vector<8x32xbf16>
    %cst = arith.constant dense<0.000000e+00> : vector<256x32xf32>
    %3 = tpu.matmul %1, %2, %cst {dimension_numbers = #tpu.dot_dimension_numbers<[1], [0], [0], [1], [0, 0, 1, 1], [], []>} : vector<256x8xbf16>, vector<8x32xbf16>, vector<256x32xf32> -> vector<256x32xf32>
    %4 = arith.truncf %3 : vector<256x32xf32> to vector<256x32xbf16>
    %c0_3 = arith.constant 0 : index
    %c0_4 = arith.constant 0 : index
    %5 = vector.load %arg4[%c0_3, %c0_4] : memref<256x32xbf16, #tpu.memory_space<vmem>>, vector<256x32xbf16>
    tpu.vector_store %arg4[%c0_3, %c0_4], %4 {strides = array<i32>} : memref<256x32xbf16, #tpu.memory_space<vmem>>, vector<256x32xbf16>,
    %c0_5 = arith.constant 0 : index
    %c0_6 = arith.constant 0 : index
    %6 = vector.load %arg3[%c0_5, %c0_6] : memref<32x4xbf16, #tpu.memory_space<vmem>>, vector<32x4xbf16>
    %cst_7 = arith.constant dense<0.000000e+00> : vector<256x4xf32>
    %7 = tpu.matmul %4, %6, %cst_7 {dimension_numbers = #tpu.dot_dimension_numbers<[1], [0], [0], [1], [0, 0, 1, 1], [], []>} : vector<256x32xbf16>, vector<32x4xbf16>, vector<256x4xf32> -> vector<256x4xf32>
    %c0_8 = arith.constant 0 : index
    %c0_9 = arith.constant 0 : index
    %8 = vector.load %arg5[%c0_8, %c0_9] : memref<256x4xf32, #tpu.memory_space<vmem>>, vector<256x4xf32>
    tpu.vector_store %arg5[%c0_8, %c0_9], %7 {strides = array<i32>} : memref<256x4xf32, #tpu.memory_space<vmem>>, vector<256x4xf32>,
    return
  }
  func.func @transform_0(%arg0: i32) -> (i32, i32) {
    %c0_i32 = arith.constant 0 : i32
    %c0_i32_0 = arith.constant 0 : i32
    return %arg0, %c0_i32 : i32, i32
  }
  func.func @transform_1(%arg0: i32) -> (i32, i32) {
    %c0_i32 = arith.constant 0 : i32
    %c0_i32_0 = arith.constant 0 : i32
    %c0_i32_1 = arith.constant 0 : i32
    return %c0_i32, %c0_i32_0 : i32, i32
  }
  func.func @transform_2(%arg0: i32) -> (i32, i32) {
    %c0_i32 = arith.constant 0 : i32
    %c0_i32_0 = arith.constant 0 : i32
    %c0_i32_1 = arith.constant 0 : i32
    return %c0_i32, %c0_i32_0 : i32, i32
  }
  func.func @transform_3(%arg0: i32) -> (i32, i32) {
    %c0_i32 = arith.constant 0 : i32
    %c0_i32_0 = arith.constant 0 : i32
    return %arg0, %c0_i32 : i32, i32
  }
  func.func @transform_4(%arg0: i32) -> (i32, i32) {
    %c0_i32 = arith.constant 0 : i32
    %c0_i32_0 = arith.constant 0 : i32
    return %arg0, %c0_i32 : i32, i32
  }
}

</mosaic_0001>

<bundles_post_ra>
// kernel: tpu_custom_call.1
= control target key start
LH: loop header
LB: loop body
LE: loop exit
PB: predicated region body
PF: predicated region fallthrough
CT: control target
= control target key end

     0   :  { %s1249_s15 = smov 0   ;;  %s1484_s0 = inlined_call_operand.vmem [shape: f32[768,8], index: 0, kind: input, shape index: {}]   ;;  %s1485_s1 = inlined_call_operand.vmem [shape: bf16[8,32], index: 1, kind: input, shape index: {}]   ;;  %s1486_s2 = inlined_call_operand.vmem [shape: bf16[32,4], index: 2, kind: input, shape index: {}]   ;;  %s1487_s3 = inlined_call_operand.vmem [shape: bf16[768,32], index: 3, kind: output, shape index: {0}]   ;;  %s1488_s4 = inlined_call_operand.vmem [shape: f32[768,4], index: 4, kind: output, shape index: {1}]  }
   0x1 LB: > { %s989_s16 = sadd.s32 4294967295, %s1222_s15   ;;  %p993_p0 = scmp.ge.s32.totalorder %s1222_s15, 1  ;;  %s1222_s15 = sphi %s1249_s15, %s15_s15  }
   0x2   : > { %p166_p1 = scmp.lt.s32.totalorder %s1222_s15, 4 }
   0x4   : > { %p167_p2 = pnand %p993_p0, %p166_p1 }
   0x5   : > { %v264_v0 = vld [vmem:[%s1485_s1] sm:$0xf] (!%p167_p2)  ;;  %vm314_vm0 = vcmask (!%p167_p2), 1043456   ;;  %s994_s19 = sshll.u32 (!%p167_p2), %s989_s16, 5  ;;  %vm265_vm1 = vcmask (!%p167_p2), 64512   ;;  %v1215_v51 = vld [vmem:[%s1486_s2 + $0x8] sm:$0xff] (!%p167_p2)  }
   0x6   : > { %170 = sbr.rel (%p167_p2) target bundleno = 510 (0x1fe), region = 32  ;;  %v1214_v1 = vld [vmem:[%s1486_s2] sm:$0xff] (!%p167_p2)   ;;  %1205 = vmatprep.subr.msk.bf16.mxu0 (!%p167_p2), %vm314_vm0, %v264_v0  ;;  %v316_v2 = vsel (!%p167_p2), %vm314_vm0, %v264_v0, 0  ;;  %p198_p3 = scmp.lt.s32.totalorder (!%p167_p2), %s994_s19, 95  ;;  %vm607_vm2 = vcmask (!%p167_p2), 257024   ;;  %vm656_vm3 = vcmask (!%p167_p2), 261120  }
   0x7   : > { %1136 = vmatpush3.bf16.msra.mxu0 (!%p167_p2), %v316_v2  ;;  %1169 = vmatprep.subr.bf16.mxu1 (!%p167_p2), %v1214_v1  ;;  %vm866_vm4 = vcmask (!%p167_p2), 31744  }
   0x8   : > { %1170 = vmatpush3.bf16.msra.mxu1 (!%p167_p2), %v1214_v1 }
   0x9   : > { %1171 = vmatprep.subr.bf16.mxu1 (!%p167_p2), %v1215_v51 }
   0xc   : > { %1172 = vmatpush3.bf16.msra.mxu1 (!%p167_p2), %v1215_v51 }
   0xd   : > { %s1490_s19 = smov (!%p198_p3, %s994_s19), 95 }
   0xe   : > { %s995_s22 = sshll.u32 %s1490_s19, 3  ;;  %s997_s28 = sshll.u32 %s1490_s19, 2 }
   0xf   : > { %s1271_s25 = scalar_lea.vmem %s1484_s0, %s995_s22  ;;  %s1328_s5 = scalar_lea.vmem %s1487_s3, %s997_s28 }
  0x10   : > { %v216_v3 = vld [vmem:[%s1271_s25] sm:$0xff]  ;;  %v217_v4 = vld [vmem:[%s1271_s25 + $0x8] sm:$0xff]  ;;  %v218_v5 = vld [vmem:[%s1271_s25 + $0x10] sm:$0xff]  ;;  %s1415_s8 = scalar_lea.vmem %s1488_s4, %s995_s22 }
  0x11   : > { %v248_v6 = vpack.c.bf16 %v217_v4, %v216_v3  ;;  %v219_v7 = vld [vmem:[%s1271_s25 + $0x18] sm:$0xff]  ;;  %v220_v8 = vld [vmem:[%s1271_s25 + $0x20] sm:$0xff]  ;;  %v221_v9 = vld [vmem:[%s1271_s25 + $0x28] sm:$0xff] }
  0x12   : > { %v249_v10 = vpack.c.bf16 %v219_v7, %v218_v5  ;;  %v250_v11 = vpack.c.bf16 %v221_v9, %v220_v8  ;;  %v222_v12 = vld [vmem:[%s1271_s25 + $0x30] sm:$0xff]  ;;  %v223_v13 = vld [vmem:[%s1271_s25 + $0x38] sm:$0xff]  ;;  %v224_v14 = vld [vmem:[%s1271_s25 + $0x40] sm:$0xff] }
  0x13   : > { %1137 = vmatprep.mubr.msk.bf16.mxu0 %vm265_vm1, %v248_v6  ;;  %v225_v15 = vld [vmem:[%s1271_s25 + $0x48] sm:$0xff]  ;;  %v251_v16 = vpack.c.bf16 %v223_v13, %v222_v12  ;;  %v226_v18 = vld [vmem:[%s1271_s25 + $0x50] sm:$0xff]  ;;  %v227_v19 = vld [vmem:[%s1271_s25 + $0x58] sm:$0xff] }
  0x14   : > { %1138 = vmatmul.mubr.msk.bf16.vlgmr.msra.gmra.mrb[0].mxu0 %vm265_vm1, %v249_v10  ;;  %v252_v17 = vpack.c.bf16 %v225_v15, %v224_v14  ;;  %v228_v20 = vld [vmem:[%s1271_s25 + $0x60] sm:$0xff]  ;;  %v229_v21 = vld [vmem:[%s1271_s25 + $0x68] sm:$0xff]  ;;  %v253_v22 = vpack.c.bf16 %v227_v19, %v226_v18  ;;  %v230_v24 = vld [vmem:[%s1271_s25 + $0x70] sm:$0xff] }
  0x15   : > { %1141 = vmatprep.mubr.msk.bf16.mxu0 %vm265_vm1, %v250_v11  ;;  %v254_v23 = vpack.c.bf16 %v229_v21, %v228_v20  ;;  %v231_v25 = vld [vmem:[%s1271_s25 + $0x78] sm:$0xff]  ;;  %v232_v26 = vld [vmem:[%s1271_s25 + $0x80] sm:$0xff]  ;;  %v233_v27 = vld [vmem:[%s1271_s25 + $0x88] sm:$0xff] }
  0x16   : > { %v255_v28 = vpack.c.bf16 %v231_v25, %v230_v24  ;;  %v256_v29 = vpack.c.bf16 %v233_v27, %v232_v26  ;;  %v234_v30 = vld [vmem:[%s1271_s25 + $0x90] sm:$0xff]  ;;  %v235_v31 = vld [vmem:[%s1271_s25 + $0x98] sm:$0xff]  ;;  %v236_v32 = vld [vmem:[%s1271_s25 + $0xa0] sm:$0xff] }
  0x17   : > { %v237_v33 = vld [vmem:[%s1271_s25 + $0xa8] sm:$0xff]  ;;  %v257_v34 = vpack.c.bf16 %v235_v31, %v234_v30  ;;  %v238_v36 = vld [vmem:[%s1271_s25 + $0xb0] sm:$0xff]  ;;  %v239_v37 = vld [vmem:[%s1271_s25 + $0xb8] sm:$0xff] }
  0x18   : > { %v258_v35 = vpack.c.bf16 %v237_v33, %v236_v32  ;;  %v240_v38 = vld [vmem:[%s1271_s25 + $0xc0] sm:$0xff]  ;;  %v241_v39 = vld [vmem:[%s1271_s25 + $0xc8] sm:$0xff]  ;;  %v259_v40 = vpack.c.bf16 %v239_v37, %v238_v36  ;;  %v242_v42 = vld [vmem:[%s1271_s25 + $0xd0] sm:$0xff] }
  0x19   : > { %v260_v41 = vpack.c.bf16 %v241_v39, %v240_v38  ;;  %v243_v43 = vld [vmem:[%s1271_s25 + $0xd8] sm:$0xff]  ;;  %v244_v44 = vld [vmem:[%s1271_s25 + $0xe0] sm:$0xff]  ;;  %v245_v45 = vld [vmem:[%s1271_s25 + $0xe8] sm:$0xff] }
  0x1a   : > { %v261_v46 = vpack.c.bf16 %v243_v43, %v242_v42  ;;  %v262_v47 = vpack.c.bf16 %v245_v45, %v244_v44  ;;  %v246_v48 = vld [vmem:[%s1271_s25 + $0xf0] sm:$0xff]  ;;  %v247_v49 = vld [vmem:[%s1271_s25 + $0xf8] sm:$0xff] }
  0x1b   : > { %v263_v50 = vpack.c.bf16 %v247_v49, %v246_v48 }
  0x1c   : > { %1142 = vmatmul.mubr.msk.bf16.gmra.mrb[4].mxu0 %vm265_vm1, %v251_v16 }
  0x1d   : > { %1145 = vmatprep.mubr.msk.bf16.mxu0 %vm265_vm1, %v252_v17 }
  0x24   : > { %1146 = vmatmul.mubr.msk.bf16.gmra.mrb[8].mxu0 %vm265_vm1, %v253_v22 }
  0x25   : > { %1149 = vmatprep.mubr.msk.bf16.mxu0 %vm265_vm1, %v254_v23 }
  0x2c   : > { %1150 = vmatmul.mubr.msk.bf16.gmra.mrb[12].mxu0 %vm265_vm1, %v255_v28 }
  0x2d   : > { %1153 = vmatprep.mubr.msk.bf16.mxu0 %vm265_vm1, %v256_v29 }
  0x34   : > { %1154 = vmatmul.mubr.msk.bf16.gmra.mrb[16].mxu0 %vm265_vm1, %v257_v34 }
  0x35   : > { %1157 = vmatprep.mubr.msk.bf16.mxu0 %vm265_vm1, %v258_v35 }
  0x3c   : > { %1158 = vmatmul.mubr.msk.bf16.gmra.mrb[20].mxu0 %vm265_vm1, %v259_v40 }
  0x3d   : > { %1161 = vmatprep.mubr.msk.bf16.mxu0 %vm265_vm1, %v260_v41 }
  0x44   : > { %1162 = vmatmul.mubr.msk.bf16.gmra.mrb[24].mxu0 %vm265_vm1, %v261_v46 }
  0x45   : > { %1165 = vmatprep.mubr.msk.bf16.mxu0 %vm265_vm1, %v262_v47 }
  0x4c   : > { %1166 = vmatmul.mubr.msk.bf16.gmra.mrb[28].mxu0 %vm265_vm1, %v263_v50 }
  0xe7   : > { %v1139_v52 = vpop.f32.mrb[0].mxu0 }
  0xe8   : > { %v1070_v53 = vpack.c.bf16 %v1139_v52, %v1139_v52  ;;  %v352_v54 = vpop.f32.mrb[1].mxu0 }
  0xe9   : > { %v1068_v55 = vpack.c.bf16 %v352_v54, %v352_v54  ;;  %v1140_v56 = vpop.f32.mrb[2].mxu0 }
  0xea   : > { %610 = vst.msk [vmem:[%s1328_s5 + $0x8] sm:$0xf] %vm607_vm2, %v1070_v53  ;;  %v480_v57 = vpack.c.bf16 %v1140_v56, %v1139_v52  ;;  %v1071_v58 = vpack.c.bf16 %v1140_v56, %v1140_v56  ;;  %v355_v59 = vpop.f32.mrb[3].mxu0 }
  0xeb   : > { %608 = vst.msk [vmem:[%s1328_s5] sm:$0xf] %vm607_vm2, %v1068_v55  ;;  %v1069_v60 = vpack.c.bf16 %v355_v59, %v355_v59  ;;  %v479_v61 = vpack.c.bf16 %v355_v59, %v352_v54 }
  0xec   : > { %611 = vst.msk [vmem:[%s1328_s5 + $0xc] sm:$0xf] %vm607_vm2, %v1071_v58 }
  0xed   : > { %609 = vst.msk [vmem:[%s1328_s5 + $0x4] sm:$0xf] %vm607_vm2, %v1069_v60  ;;  %1173 = vmatprep.mubr.msk.bf16.mxu1 %vm656_vm3, %v479_v61 }
  0xee   : > { %1174 = vmatmul.mubr.msk.bf16.vlgmr.msra.gmra.mrb[0].mxu1 %vm656_vm3, %v480_v57 }
  0xef   : > { %v1143_v62 = vpop.f32.mrb[4].mxu0 }
  0xf0   : > { %v1074_v63 = vpack.c.bf16 %v1143_v62, %v1143_v62  ;;  %v368_v0 = vpop.f32.mrb[5].mxu0 }
  0xf1   : > { %v1072_v1 = vpack.c.bf16 %v368_v0, %v368_v0  ;;  %v1144_v2 = vpop.f32.mrb[6].mxu0 }
  0xf2   : > { %614 = vst.msk [vmem:[%s1328_s5 + $0x18] sm:$0xf] %vm607_vm2, %v1074_v63  ;;  %v482_v3 = vpack.c.bf16 %v1144_v2, %v1143_v62  ;;  %v1075_v4 = vpack.c.bf16 %v1144_v2, %v1144_v2  ;;  %v371_v5 = vpop.f32.mrb[7].mxu0 }
  0xf3   : > { %612 = vst.msk [vmem:[%s1328_s5 + $0x10] sm:$0xf] %vm607_vm2, %v1072_v1  ;;  %v481_v6 = vpack.c.bf16 %v371_v5, %v368_v0  ;;  %v1073_v7 = vpack.c.bf16 %v371_v5, %v371_v5 }
  0xf4   : > { %615 = vst.msk [vmem:[%s1328_s5 + $0x1c] sm:$0xf] %vm607_vm2, %v1075_v4 }
  0xf5   : > { %613 = vst.msk [vmem:[%s1328_s5 + $0x14] sm:$0xf] %vm607_vm2, %v1073_v7  ;;  %1177 = vmatprep.mubr.msk.bf16.mxu1 %vm656_vm3, %v481_v6 }
  0xf6   : > { %1178 = vmatmul.mubr.msk.bf16.gmra.mrb[4].mxu1 %vm656_vm3, %v482_v3 }
  0xf7   : > { %v1147_v8 = vpop.f32.mrb[8].mxu0 }
  0xf8   : > { %v1078_v9 = vpack.c.bf16 %v1147_v8, %v1147_v8  ;;  %v384_v10 = vpop.f32.mrb[9].mxu0 }
  0xf9   : > { %v1076_v11 = vpack.c.bf16 %v384_v10, %v384_v10  ;;  %v1148_v12 = vpop.f32.mrb[10].mxu0 }
  0xfa   : > { %618 = vst.msk [vmem:[%s1328_s5 + $0x28] sm:$0xf] %vm607_vm2, %v1078_v9  ;;  %v484_v13 = vpack.c.bf16 %v1148_v12, %v1147_v8  ;;  %v1079_v14 = vpack.c.bf16 %v1148_v12, %v1148_v12  ;;  %v387_v15 = vpop.f32.mrb[11].mxu0 }
  0xfb   : > { %616 = vst.msk [vmem:[%s1328_s5 + $0x20] sm:$0xf] %vm607_vm2, %v1076_v11  ;;  %v483_v16 = vpack.c.bf16 %v387_v15, %v384_v10  ;;  %v1077_v17 = vpack.c.bf16 %v387_v15, %v387_v15 }
  0xfc   : > { %619 = vst.msk [vmem:[%s1328_s5 + $0x2c] sm:$0xf] %vm607_vm2, %v1079_v14 }
  0xfd   : > { %617 = vst.msk [vmem:[%s1328_s5 + $0x24] sm:$0xf] %vm607_vm2, %v1077_v17  ;;  %1181 = vmatprep.mubr.msk.bf16.mxu1 %vm656_vm3, %v483_v16 }
  0xfe   : > { %1182 = vmatmul.mubr.msk.bf16.gmra.mrb[8].mxu1 %vm656_vm3, %v484_v13 }
  0xff   : > { %v1151_v18 = vpop.f32.mrb[12].mxu0 }
 0x100   : > { %v1082_v19 = vpack.c.bf16 %v1151_v18, %v1151_v18  ;;  %v400_v20 = vpop.f32.mrb[13].mxu0 }
 0x101   : > { %v1080_v21 = vpack.c.bf16 %v400_v20, %v400_v20  ;;  %v1152_v22 = vpop.f32.mrb[14].mxu0 }
 0x102   : > { %622 = vst.msk [vmem:[%s1328_s5 + $0x38] sm:$0xf] %vm607_vm2, %v1082_v19  ;;  %v486_v23 = vpack.c.bf16 %v1152_v22, %v1151_v18  ;;  %v1083_v24 = vpack.c.bf16 %v1152_v22, %v1152_v22  ;;  %v403_v25 = vpop.f32.mrb[15].mxu0 }
 0x103   : > { %620 = vst.msk [vmem:[%s1328_s5 + $0x30] sm:$0xf] %vm607_vm2, %v1080_v21  ;;  %v485_v26 = vpack.c.bf16 %v403_v25, %v400_v20  ;;  %v1081_v27 = vpack.c.bf16 %v403_v25, %v403_v25 }
 0x104   : > { %623 = vst.msk [vmem:[%s1328_s5 + $0x3c] sm:$0xf] %vm607_vm2, %v1083_v24 }
 0x105   : > { %621 = vst.msk [vmem:[%s1328_s5 + $0x34] sm:$0xf] %vm607_vm2, %v1081_v27  ;;  %1185 = vmatprep.mubr.msk.bf16.mxu1 %vm656_vm3, %v485_v26 }
 0x106   : > { %1186 = vmatmul.mubr.msk.bf16.gmra.mrb[12].mxu1 %vm656_vm3, %v486_v23 }
 0x107   : > { %v1155_v28 = vpop.f32.mrb[16].mxu0 }
 0x108   : > { %v1086_v29 = vpack.c.bf16 %v1155_v28, %v1155_v28  ;;  %v416_v30 = vpop.f32.mrb[17].mxu0 }
 0x109   : > { %v1084_v31 = vpack.c.bf16 %v416_v30, %v416_v30  ;;  %v1156_v32 = vpop.f32.mrb[18].mxu0 }
 0x10a   : > { %626 = vst.msk [vmem:[%s1328_s5 + $0x48] sm:$0xf] %vm607_vm2, %v1086_v29  ;;  %v488_v33 = vpack.c.bf16 %v1156_v32, %v1155_v28  ;;  %v1087_v34 = vpack.c.bf16 %v1156_v32, %v1156_v32  ;;  %v419_v35 = vpop.f32.mrb[19].mxu0 }
 0x10b   : > { %624 = vst.msk [vmem:[%s1328_s5 + $0x40] sm:$0xf] %vm607_vm2, %v1084_v31  ;;  %v487_v36 = vpack.c.bf16 %v419_v35, %v416_v30  ;;  %v1085_v37 = vpack.c.bf16 %v419_v35, %v419_v35 }
 0x10c   : > { %627 = vst.msk [vmem:[%s1328_s5 + $0x4c] sm:$0xf] %vm607_vm2, %v1087_v34 }
 0x10d   : > { %625 = vst.msk [vmem:[%s1328_s5 + $0x44] sm:$0xf] %vm607_vm2, %v1085_v37  ;;  %1189 = vmatprep.mubr.msk.bf16.mxu1 %vm656_vm3, %v487_v36 }
 0x10e   : > { %1190 = vmatmul.mubr.msk.bf16.gmra.mrb[16].mxu1 %vm656_vm3, %v488_v33 }
 0x10f   : > { %v1159_v38 = vpop.f32.mrb[20].mxu0 }
 0x110   : > { %v1090_v39 = vpack.c.bf16 %v1159_v38, %v1159_v38  ;;  %v432_v40 = vpop.f32.mrb[21].mxu0 }
 0x111   : > { %v1088_v41 = vpack.c.bf16 %v432_v40, %v432_v40  ;;  %v1160_v42 = vpop.f32.mrb[22].mxu0 }
 0x112   : > { %630 = vst.msk [vmem:[%s1328_s5 + $0x58] sm:$0xf] %vm607_vm2, %v1090_v39  ;;  %v490_v43 = vpack.c.bf16 %v1160_v42, %v1159_v38  ;;  %v1091_v44 = vpack.c.bf16 %v1160_v42, %v1160_v42  ;;  %v435_v45 = vpop.f32.mrb[23].mxu0 }
 0x113   : > { %628 = vst.msk [vmem:[%s1328_s5 + $0x50] sm:$0xf] %vm607_vm2, %v1088_v41  ;;  %v489_v46 = vpack.c.bf16 %v435_v45, %v432_v40  ;;  %v1089_v47 = vpack.c.bf16 %v435_v45, %v435_v45 }
 0x114   : > { %631 = vst.msk [vmem:[%s1328_s5 + $0x5c] sm:$0xf] %vm607_vm2, %v1091_v44 }
 0x115   : > { %629 = vst.msk [vmem:[%s1328_s5 + $0x54] sm:$0xf] %vm607_vm2, %v1089_v47  ;;  %1193 = vmatprep.mubr.msk.bf16.mxu1 %vm656_vm3, %v489_v46 }
 0x116   : > { %1194 = vmatmul.mubr.msk.bf16.gmra.mrb[20].mxu1 %vm656_vm3, %v490_v43 }
 0x117   : > { %v1163_v48 = vpop.f32.mrb[24].mxu0 }
 0x118   : > { %v1094_v49 = vpack.c.bf16 %v1163_v48, %v1163_v48  ;;  %v448_v50 = vpop.f32.mrb[25].mxu0 }
 0x119   : > { %v1092_v51 = vpack.c.bf16 %v448_v50, %v448_v50  ;;  %v1164_v52 = vpop.f32.mrb[26].mxu0 }
 0x11a   : > { %634 = vst.msk [vmem:[%s1328_s5 + $0x68] sm:$0xf] %vm607_vm2, %v1094_v49  ;;  %v492_v53 = vpack.c.bf16 %v1164_v52, %v1163_v48  ;;  %v1095_v54 = vpack.c.bf16 %v1164_v52, %v1164_v52  ;;  %v451_v55 = vpop.f32.mrb[27].mxu0 }
 0x11b   : > { %632 = vst.msk [vmem:[%s1328_s5 + $0x60] sm:$0xf] %vm607_vm2, %v1092_v51  ;;  %v491_v56 = vpack.c.bf16 %v451_v55, %v448_v50  ;;  %v1093_v57 = vpack.c.bf16 %v451_v55, %v451_v55 }
 0x11c   : > { %635 = vst.msk [vmem:[%s1328_s5 + $0x6c] sm:$0xf] %vm607_vm2, %v1095_v54 }
 0x11d   : > { %633 = vst.msk [vmem:[%s1328_s5 + $0x64] sm:$0xf] %vm607_vm2, %v1093_v57  ;;  %1197 = vmatprep.mubr.msk.bf16.mxu1 %vm656_vm3, %v491_v56 }
 0x11e   : > { %1198 = vmatmul.mubr.msk.bf16.gmra.mrb[24].mxu1 %vm656_vm3, %v492_v53 }
 0x11f   : > { %v1167_v58 = vpop.f32.mrb[28].mxu0 }
 0x120   : > { %v1098_v59 = vpack.c.bf16 %v1167_v58, %v1167_v58  ;;  %v464_v60 = vpop.f32.mrb[29].mxu0 }
 0x121   : > { %v1096_v61 = vpack.c.bf16 %v464_v60, %v464_v60  ;;  %v1168_v62 = vpop.f32.mrb[30].mxu0 }
 0x122   : > { %638 = vst.msk [vmem:[%s1328_s5 + $0x78] sm:$0xf] %vm607_vm2, %v1098_v59  ;;  %v494_v63 = vpack.c.bf16 %v1168_v62, %v1167_v58  ;;  %v1099_v0 = vpack.c.bf16 %v1168_v62, %v1168_v62  ;;  %v467_v1 = vpop.f32.mrb[31].mxu0 }
 0x123   : > { %636 = vst.msk [vmem:[%s1328_s5 + $0x70] sm:$0xf] %vm607_vm2, %v1096_v61  ;;  %v493_v2 = vpack.c.bf16 %v467_v1, %v464_v60  ;;  %v1097_v3 = vpack.c.bf16 %v467_v1, %v467_v1 }
 0x124   : > { %639 = vst.msk [vmem:[%s1328_s5 + $0x7c] sm:$0xf] %vm607_vm2, %v1099_v0 }
 0x125   : > { %637 = vst.msk [vmem:[%s1328_s5 + $0x74] sm:$0xf] %vm607_vm2, %v1097_v3  ;;  %1201 = vmatprep.mubr.msk.bf16.mxu1 %vm656_vm3, %v493_v2 }
 0x126   : > { %1202 = vmatmul.mubr.msk.bf16.gmra.mrb[28].mxu1 %vm656_vm3, %v494_v63 }
 0x1c1   : > { %v1175_v4 = vpop.f32.mrb[0].mxu1 }
 0x1c2   : > { %869 = vst.msk [vmem:[%s1415_s8 + $0x10] sm:$0xff] %vm866_vm4, %v1175_v4  ;;  %v739_v5 = vpop.f32.mrb[1].mxu1 }
 0x1c3   : > { %867 = vst.msk [vmem:[%s1415_s8] sm:$0xff] %vm866_vm4, %v739_v5  ;;  %v1176_v6 = vpop.f32.mrb[2].mxu1 }
 0x1c4   : > { %870 = vst.msk [vmem:[%s1415_s8 + $0x18] sm:$0xff] %vm866_vm4, %v1176_v6  ;;  %v742_v7 = vpop.f32.mrb[3].mxu1 }
 0x1c5   : > { %868 = vst.msk [vmem:[%s1415_s8 + $0x8] sm:$0xff] %vm866_vm4, %v742_v7 }
 0x1c9   : > { %v1179_v8 = vpop.f32.mrb[4].mxu1 }
 0x1ca   : > { %873 = vst.msk [vmem:[%s1415_s8 + $0x30] sm:$0xff] %vm866_vm4, %v1179_v8  ;;  %v755_v9 = vpop.f32.mrb[5].mxu1 }
 0x1cb   : > { %871 = vst.msk [vmem:[%s1415_s8 + $0x20] sm:$0xff] %vm866_vm4, %v755_v9  ;;  %v1180_v10 = vpop.f32.mrb[6].mxu1 }
 0x1cc   : > { %874 = vst.msk [vmem:[%s1415_s8 + $0x38] sm:$0xff] %vm866_vm4, %v1180_v10  ;;  %v758_v11 = vpop.f32.mrb[7].mxu1 }
 0x1cd   : > { %872 = vst.msk [vmem:[%s1415_s8 + $0x28] sm:$0xff] %vm866_vm4, %v758_v11 }
 0x1d1   : > { %v1183_v12 = vpop.f32.mrb[8].mxu1 }
 0x1d2   : > { %877 = vst.msk [vmem:[%s1415_s8 + $0x50] sm:$0xff] %vm866_vm4, %v1183_v12  ;;  %v771_v13 = vpop.f32.mrb[9].mxu1 }
 0x1d3   : > { %875 = vst.msk [vmem:[%s1415_s8 + $0x40] sm:$0xff] %vm866_vm4, %v771_v13  ;;  %v1184_v14 = vpop.f32.mrb[10].mxu1 }
 0x1d4   : > { %878 = vst.msk [vmem:[%s1415_s8 + $0x58] sm:$0xff] %vm866_vm4, %v1184_v14  ;;  %v774_v15 = vpop.f32.mrb[11].mxu1 }
 0x1d5   : > { %876 = vst.msk [vmem:[%s1415_s8 + $0x48] sm:$0xff] %vm866_vm4, %v774_v15 }
 0x1d9   : > { %v1187_v16 = vpop.f32.mrb[12].mxu1 }
 0x1da   : > { %881 = vst.msk [vmem:[%s1415_s8 + $0x70] sm:$0xff] %vm866_vm4, %v1187_v16  ;;  %v787_v17 = vpop.f32.mrb[13].mxu1 }
 0x1db   : > { %879 = vst.msk [vmem:[%s1415_s8 + $0x60] sm:$0xff] %vm866_vm4, %v787_v17  ;;  %v1188_v18 = vpop.f32.mrb[14].mxu1 }
 0x1dc   : > { %882 = vst.msk [vmem:[%s1415_s8 + $0x78] sm:$0xff] %vm866_vm4, %v1188_v18  ;;  %v790_v19 = vpop.f32.mrb[15].mxu1 }
 0x1dd   : > { %880 = vst.msk [vmem:[%s1415_s8 + $0x68] sm:$0xff] %vm866_vm4, %v790_v19 }
 0x1e1   : > { %v1191_v20 = vpop.f32.mrb[16].mxu1 }
 0x1e2   : > { %885 = vst.msk [vmem:[%s1415_s8 + $0x90] sm:$0xff] %vm866_vm4, %v1191_v20  ;;  %v803_v21 = vpop.f32.mrb[17].mxu1 }
 0x1e3   : > { %883 = vst.msk [vmem:[%s1415_s8 + $0x80] sm:$0xff] %vm866_vm4, %v803_v21  ;;  %v1192_v22 = vpop.f32.mrb[18].mxu1 }
 0x1e4   : > { %886 = vst.msk [vmem:[%s1415_s8 + $0x98] sm:$0xff] %vm866_vm4, %v1192_v22  ;;  %v806_v23 = vpop.f32.mrb[19].mxu1 }
 0x1e5   : > { %884 = vst.msk [vmem:[%s1415_s8 + $0x88] sm:$0xff] %vm866_vm4, %v806_v23 }
 0x1e9   : > { %v1195_v24 = vpop.f32.mrb[20].mxu1 }
 0x1ea   : > { %889 = vst.msk [vmem:[%s1415_s8 + $0xb0] sm:$0xff] %vm866_vm4, %v1195_v24  ;;  %v819_v25 = vpop.f32.mrb[21].mxu1 }
 0x1eb   : > { %887 = vst.msk [vmem:[%s1415_s8 + $0xa0] sm:$0xff] %vm866_vm4, %v819_v25  ;;  %v1196_v26 = vpop.f32.mrb[22].mxu1 }
 0x1ec   : > { %890 = vst.msk [vmem:[%s1415_s8 + $0xb8] sm:$0xff] %vm866_vm4, %v1196_v26  ;;  %v822_v27 = vpop.f32.mrb[23].mxu1 }
 0x1ed   : > { %888 = vst.msk [vmem:[%s1415_s8 + $0xa8] sm:$0xff] %vm866_vm4, %v822_v27 }
 0x1f1   : > { %v1199_v28 = vpop.f32.mrb[24].mxu1 }
 0x1f2   : > { %893 = vst.msk [vmem:[%s1415_s8 + $0xd0] sm:$0xff] %vm866_vm4, %v1199_v28  ;;  %v835_v29 = vpop.f32.mrb[25].mxu1 }
 0x1f3   : > { %891 = vst.msk [vmem:[%s1415_s8 + $0xc0] sm:$0xff] %vm866_vm4, %v835_v29  ;;  %v1200_v30 = vpop.f32.mrb[26].mxu1 }
 0x1f4   : > { %894 = vst.msk [vmem:[%s1415_s8 + $0xd8] sm:$0xff] %vm866_vm4, %v1200_v30  ;;  %v838_v31 = vpop.f32.mrb[27].mxu1 }
 0x1f5   : > { %892 = vst.msk [vmem:[%s1415_s8 + $0xc8] sm:$0xff] %vm866_vm4, %v838_v31 }
 0x1f9   : > { %v1203_v32 = vpop.f32.mrb[28].mxu1 }
 0x1fa   : > { %897 = vst.msk [vmem:[%s1415_s8 + $0xf0] sm:$0xff] %vm866_vm4, %v1203_v32  ;;  %v851_v33 = vpop.f32.mrb[29].mxu1 }
 0x1fb   : > { %895 = vst.msk [vmem:[%s1415_s8 + $0xe0] sm:$0xff] %vm866_vm4, %v851_v33  ;;  %v1204_v34 = vpop.f32.mrb[30].mxu1 }
 0x1fc   : > { %898 = vst.msk [vmem:[%s1415_s8 + $0xf8] sm:$0xff] %vm866_vm4, %v1204_v34  ;;  %v854_v35 = vpop.f32.mrb[31].mxu1 }
 0x1fd   : > { %896 = vst.msk [vmem:[%s1415_s8 + $0xe8] sm:$0xff] %vm866_vm4, %v854_v35 }
 0x1fe PF: > { %s15_s15 = sadd.s32 1, %s1222_s15  }
 0x1ff   : > { %p12_p4 = scmp.ge.s32.totalorder %s15_s15, 5  }
 0x201   :  { %14 = sbr.rel (!%p12_p4) target bundleno = 1 (0x1), region = 74 }

</bundles_post_ra>
